<compile_context>
chip_gen: v7x
topology: tpu7x:2x2x1
jax: 0.10.0
libtpu: 0.0.40
codegen_flags: <defaults>
</compile_context>

<pallas_src>
import jax
import jax.numpy as jnp
from jax.experimental import pallas as pl

# ---- module hyper-params (mirrors argparse args) ----
EMBED_DIM = 32           # args.encoder_embed_dim
NUM_HEADS = 4            # args.encoder_attention_heads
HEAD_DIM = EMBED_DIM // NUM_HEADS
SEQ_LEN = 8
BATCH = 2
NORMALIZE_BEFORE = True  # args.encoder_normalize_before
LN_EPS = 1e-5
NEG_INF = -1.0e8         # masked_fill value used in the reference forward


def _attn_gen_kernel(x_ref, bias_ref, hm_ref, wqk_ref, bqk_ref, out_ref):
    """Single gridless invocation; all (batch, head) pairs handled in one pass.

    x_ref   : (B*S, E)       input rows, batch-major
    bias_ref: (H*B*S, B*S)   precomputed additive bias: attn_mask + key-padding for same-batch
                             columns, -1e8 for cross-batch columns (underflows to exactly 0)
    hm_ref  : (H*B*S, E)     head mask: row block h keeps only head-h embed columns
    wqk_ref : (E, 2E)        fused Q|K projection (LN gain/bias + 1/sqrt(d) folded in)
    bqk_ref : (1, 2E)        fused Q|K bias
    out_ref : (H*B*S, B*S)   softmax probabilities, head-major rows, all-batch columns
    """
    E = EMBED_DIM

    x2 = x_ref[...]                                              # (B*S, E)
    if NORMALIZE_BEFORE:
        # gain/bias are folded into wqk/bqk -> only mean/var normalization here,
        # done once over all B*S rows.
        mean = jnp.mean(x2, axis=-1, keepdims=True)
        xc = x2 - mean
        var = jnp.mean(xc * xc, axis=-1, keepdims=True)
        x2 = xc * jax.lax.rsqrt(var + LN_EPS)

    # fused Q|K projection: one (B*S, E) @ (E, 2E) MXU matmul for all batches
    qk = jnp.dot(x2, wqk_ref[...], preferred_element_type=jnp.float32) + bqk_ref[...]
    q = qk[:, :E]                                                # (B*S, E), carries 1/sqrt(d)
    k = qk[:, E:]                                                # (B*S, E)

    # head-major replicated Q with block-diagonal head masking:
    #   q_bd[h*B*S + r, e] = q[r, e] if e in head-h columns else 0
    # One sublane-aligned concatenate + one multiply; no per-head slicing.
    q_rep = jnp.concatenate([q] * NUM_HEADS, axis=0)             # (H*B*S, E)
    q_bd = q_rep * hm_ref[...]

    # all heads & batches in ONE MXU contraction (contract over the full embed dim;
    # zeros in q_bd restrict it to the per-head sub-range). Cross-batch columns get
    # -1e8 from bias_ref and vanish in the softmax.
    s = jax.lax.dot_general(q_bd, k, (((1,), (1,)), ((), ())),
                            preferred_element_type=jnp.float32)  # (H*B*S, B*S)
    s = s + bias_ref[...]

    # numerically stable softmax over the (all-batch) src axis; exact division
    m = jnp.max(s, axis=-1, keepdims=True)
    e = jnp.exp(s - m)
    out_ref[...] = e / jnp.sum(e, axis=-1, keepdims=True)        # one dense (64,16) store


def prepare_params(params, normalize_before=NORMALIZE_BEFORE):
    """Fold LayerNorm gain/bias and the 1/sqrt(head_dim) scale into a fused Q|K projection.

    Done once (cached as jit constants by build_forward); the kernel then only normalizes
    (mean/var) and runs a single (E, 2E) matmul.
    """
    E = EMBED_DIM
    hi = jax.lax.Precision.HIGHEST
    scaling = HEAD_DIM ** -0.5
    wqT = params["wq"].T.astype(jnp.float32)     # x_ln @ Wq^T
    wkT = params["wk"].T.astype(jnp.float32)
    bq = params["bq"].astype(jnp.float32)
    bk = params["bk"].astype(jnp.float32)

    if normalize_before:
        ln_w = params["ln_w"].astype(jnp.float32)
        ln_b = params["ln_b"].astype(jnp.float32)
        # x_ln = xn*ln_w + ln_b  =>  x_ln @ W^T = xn @ (ln_w[:,None]*W^T) + ln_b @ W^T
        a_q = ln_w[:, None] * wqT
        a_k = ln_w[:, None] * wkT
        c_q = bq + jnp.dot(ln_b, wqT, precision=hi)
        c_k = bk + jnp.dot(ln_b, wkT, precision=hi)
    else:
        a_q, a_k, c_q, c_k = wqT, wkT, bq, bk

    a_q = a_q * scaling
    c_q = c_q * scaling
    wqk = jnp.concatenate([a_q, a_k], axis=1)                    # (E, 2E)
    bqk = jnp.concatenate([c_q, c_k]).reshape(1, 2 * E)          # (1, 2E)
    return wqk, bqk


def _make_head_mask(batch, seq_len):
    """(H*B*S, E) mask: row block h keeps only the head-h embed columns."""
    head_ids = jnp.repeat(jnp.arange(NUM_HEADS), batch * seq_len)   # (H*B*S,)
    col_head = jnp.arange(EMBED_DIM) // HEAD_DIM                    # (E,)
    return (head_ids[:, None] == col_head[None, :]).astype(jnp.float32)


def build_forward(params, batch=BATCH, seq_len=SEQ_LEN):
    """Fold params / build constants once; return a jitted forward(x, pad_mask, attn_mask)."""
    wqk, bqk = prepare_params(params)                 # cached as jit constants
    head_mask = _make_head_mask(batch, seq_len)       # cached as jit constant

    @jax.jit
    def forward(x_sbe, encoder_padding_mask, attn_mask):
        S, B, E = x_sbe.shape
        H = NUM_HEADS

        # (S,B,E) -> (B*S,E) slab; wrapper-side layout plumbing, fused into the jit.
        x2 = jnp.transpose(x_sbe, (1, 0, 2)).reshape(B * S, E).astype(jnp.float32)

        # full additive bias, precomputed once per call (fused into the jit):
        #   bias[h*B*S + b*S + i, b2*S + j] = attn_bias[i,j] + pad_bias[b2,j]  if b2 == b
        #                                     -1e8                              otherwise
        attn_bias = jnp.where(attn_mask != 0, NEG_INF, 0.0).astype(jnp.float32)          # (S,S)
        pad_bias = jnp.where(encoder_padding_mask != 0, NEG_INF, 0.0).astype(jnp.float32)  # (B,S)
        same_batch = jnp.eye(B, dtype=jnp.float32)
        bias4 = jnp.where(same_batch[:, None, :, None] > 0,
                          attn_bias[None, :, None, :] + pad_bias[None, None, :, :],
                          NEG_INF)                                                        # (B,S,B,S)
        bias_full = jnp.tile(bias4.reshape(B * S, B * S), (H, 1))                         # (H*B*S, B*S)

        flat = pl.pallas_call(
            _attn_gen_kernel,
            out_shape=jax.ShapeDtypeStruct((H * B * S, B * S), jnp.float32),
            # no grid: whole-array VMEM blocks (everything is <20 KiB), zero per-step overhead
        )(x2, bias_full, head_mask, wqk, bqk)

        # extract the per-batch diagonal blocks: (H*B*S, B*S) -> (B, H, S, S)
        p5 = flat.reshape(H, B, S, B, S)
        bidx = jnp.arange(B)
        return p5[:, bidx, :, bidx, :]                # out[b,h,i,j] = p5[h,b,i,b,j]

    return forward


def _reference(x_sbe, pad_mask, attn_mask, params):
    """Pure-JAX reference of the same forward semantics (for verification)."""
    S, B, E = x_sbe.shape
    hi = jax.lax.Precision.HIGHEST
    x = jnp.transpose(x_sbe, (1, 0, 2)).astype(jnp.float32)
    if NORMALIZE_BEFORE:
        mean = x.mean(-1, keepdims=True)
        var = ((x - mean) ** 2).mean(-1, keepdims=True)
        x = (x - mean) / jnp.sqrt(var + LN_EPS) * params["ln_w"] + params["ln_b"]
    q = (jnp.dot(x, params["wq"].T, precision=hi) + params["bq"]) * (HEAD_DIM ** -0.5)
    k = jnp.dot(x, params["wk"].T, precision=hi) + params["bk"]
    q = q.reshape(B, S, NUM_HEADS, HEAD_DIM).transpose(0, 2, 1, 3)
    k = k.reshape(B, S, NUM_HEADS, HEAD_DIM).transpose(0, 2, 1, 3)
    s = jnp.einsum("bhqd,bhkd->bhqk", q, k, precision=hi)
    bias = jnp.where(attn_mask != 0, NEG_INF, 0.0)[None, None]
    bias = bias + jnp.where(pad_mask != 0, NEG_INF, 0.0)[:, None, None, :]
    return jax.nn.softmax(s + bias, axis=-1)


def _init_params(key, embed_dim):
    ks = jax.random.split(key, 6)
    bound = 1.0 / jnp.sqrt(embed_dim)
    return {
        # non-trivial LN params so the weight-folding path is actually exercised
        "ln_w": 1.0 + 0.1 * jax.random.normal(ks[0], (embed_dim,), jnp.float32),
        "ln_b": 0.1 * jax.random.normal(ks[1], (embed_dim,), jnp.float32),
        "wq": jax.random.uniform(ks[2], (embed_dim, embed_dim), jnp.float32, -bound, bound),
        "bq": jax.random.uniform(ks[3], (embed_dim,), jnp.float32, -bound, bound),
        "wk": jax.random.uniform(ks[4], (embed_dim, embed_dim), jnp.float32, -bound, bound),
        "bk": jax.random.uniform(ks[5], (embed_dim,), jnp.float32, -bound, bound),
    }


if __name__ == "__main__":
    root = jax.random.PRNGKey(0)
    k_p, k_x = jax.random.split(root, 2)

    params = _init_params(k_p, EMBED_DIM)

    # x: (seq_len, batch, embed_dim), matching the fairseq convention
    x = jax.random.normal(k_x, (SEQ_LEN, BATCH, EMBED_DIM), jnp.float32)

    # padding: last 2 tokens of batch element 1 are padding (value 1)
    pad_mask = jnp.zeros((BATCH, SEQ_LEN), jnp.float32).at[1, -2:].set(1.0)

    # strided attn_mask: mask out src positions whose index differs by >= 6
    idx = jnp.arange(SEQ_LEN)
    attn_mask = (jnp.abs(idx[:, None] - idx[None, :]) >= 6).astype(jnp.float32)

    forward = build_forward(params)          # param folding / head mask built once
    out = jax.block_until_ready(forward(x, pad_mask, attn_mask))

    ref = _reference(x, pad_mask, attn_mask, params)
    assert out.shape == (BATCH, NUM_HEADS, SEQ_LEN, SEQ_LEN)
    # exact softmax division -> tight tolerance (was 5e-3 with the approx reciprocal)
    assert jnp.allclose(out, ref, atol=1e-4, rtol=1e-4), "mismatch vs pure-JAX reference"

    print("KERNEL_OK")
</pallas_src>

<mosaic_0001>
module attributes {stable_mosaic.version = 11 : i64} {
  func.func @_attn_gen_kernel(%arg0: memref<16x32xf32, #tpu.memory_space<vmem>>, %arg1: memref<64x16xf32, #tpu.memory_space<vmem>>, %arg2: memref<64x32xf32, #tpu.memory_space<vmem>>, %arg3: memref<32x64xf32, #tpu.memory_space<vmem>>, %arg4: memref<1x64xf32, #tpu.memory_space<vmem>>, %arg5: memref<64x16xf32, #tpu.memory_space<vmem>>) attributes {dimension_semantics = [], scalar_prefetch = 0 : i64, scratch_operands = 0 : i64, tpu.core_type = #tpu.core_type<tc>} {
    %c0 = arith.constant 0 : index
    %c0_0 = arith.constant 0 : index
    %0 = vector.load %arg0[%c0, %c0_0] : memref<16x32xf32, #tpu.memory_space<vmem>>, vector<16x32xf32>
    %cst = arith.constant dense<0.000000e+00> : vector<16xf32>
    %1 = vector.multi_reduction <add>, %0, %cst [1] : vector<16x32xf32> to vector<16xf32>
    %2 = vector.shape_cast %1 : vector<16xf32> to vector<16x1xf32>
    %cst_1 = arith.constant 3.200000e+01 : f32
    %3 = vector.broadcast %cst_1 : f32 to vector<16x1xf32>
    %4 = arith.divf %2, %3 : vector<16x1xf32>
    %5 = vector.broadcast %4 : vector<16x1xf32> to vector<16x32xf32>
    %6 = arith.subf %0, %5 : vector<16x32xf32>
    %7 = arith.mulf %6, %6 : vector<16x32xf32>
    %cst_2 = arith.constant dense<0.000000e+00> : vector<16xf32>
    %8 = vector.multi_reduction <add>, %7, %cst_2 [1] : vector<16x32xf32> to vector<16xf32>
    %9 = vector.shape_cast %8 : vector<16xf32> to vector<16x1xf32>
    %cst_3 = arith.constant 3.200000e+01 : f32
    %10 = vector.broadcast %cst_3 : f32 to vector<16x1xf32>
    %11 = arith.divf %9, %10 : vector<16x1xf32>
    %cst_4 = arith.constant 9.99999974E-6 : f32
    %12 = vector.broadcast %cst_4 : f32 to vector<16x1xf32>
    %13 = arith.addf %11, %12 : vector<16x1xf32>
    %14 = math.rsqrt %13 : vector<16x1xf32>
    %15 = vector.broadcast %14 : vector<16x1xf32> to vector<16x32xf32>
    %16 = arith.mulf %6, %15 : vector<16x32xf32>
    %c0_5 = arith.constant 0 : index
    %c0_6 = arith.constant 0 : index
    %17 = vector.load %arg3[%c0_5, %c0_6] : memref<32x64xf32, #tpu.memory_space<vmem>>, vector<32x64xf32>
    %cst_7 = arith.constant dense<0.000000e+00> : vector<16x64xf32>
    %18 = tpu.matmul %16, %17, %cst_7 {dimension_numbers = #tpu.dot_dimension_numbers<[1], [0], [0], [1], [0, 0, 1, 1], [], []>} : vector<16x32xf32>, vector<32x64xf32>, vector<16x64xf32> -> vector<16x64xf32>
    %c0_8 = arith.constant 0 : index
    %c0_9 = arith.constant 0 : index
    %19 = vector.load %arg4[%c0_8, %c0_9] : memref<1x64xf32, #tpu.memory_space<vmem>>, vector<1x64xf32>
    %20 = vector.broadcast %19 : vector<1x64xf32> to vector<16x64xf32>
    %21 = arith.addf %18, %20 : vector<16x64xf32>
    %22 = vector.extract_strided_slice %21 {offsets = [0, 0], sizes = [16, 32], strides = [1, 1]} : vector<16x64xf32> to vector<16x32xf32>
    %23 = vector.extract_strided_slice %21 {offsets = [0, 32], sizes = [16, 32], strides = [1, 1]} : vector<16x64xf32> to vector<16x32xf32>
    %24 = tpu.concatenate %22, %22, %22, %22 in 0 : vector<16x32xf32>, vector<16x32xf32>, vector<16x32xf32>, vector<16x32xf32> -> vector<64x32xf32>
    %c0_10 = arith.constant 0 : index
    %c0_11 = arith.constant 0 : index
    %25 = vector.load %arg2[%c0_10, %c0_11] : memref<64x32xf32, #tpu.memory_space<vmem>>, vector<64x32xf32>
    %26 = arith.mulf %24, %25 : vector<64x32xf32>
    %cst_12 = arith.constant dense<0.000000e+00> : vector<64x16xf32>
    %27 = tpu.matmul %26, %23, %cst_12 {dimension_numbers = #tpu.dot_dimension_numbers<[1], [1], [0], [0], [0, 0, 1, 0], [], []>} : vector<64x32xf32>, vector<16x32xf32>, vector<64x16xf32> -> vector<64x16xf32>
    %c0_13 = arith.constant 0 : index
    %c0_14 = arith.constant 0 : index
    %28 = vector.load %arg1[%c0_13, %c0_14] : memref<64x16xf32, #tpu.memory_space<vmem>>, vector<64x16xf32>
    %29 = arith.addf %27, %28 : vector<64x16xf32>
    %cst_15 = arith.constant dense<0xFF800000> : vector<64xf32>
    %30 = vector.multi_reduction <maximumf>, %29, %cst_15 [1] : vector<64x16xf32> to vector<64xf32>
    %31 = vector.shape_cast %30 : vector<64xf32> to vector<64x1xf32>
    %32 = vector.broadcast %31 : vector<64x1xf32> to vector<64x16xf32>
    %33 = arith.subf %29, %32 : vector<64x16xf32>
    %34 = math.exp %33 : vector<64x16xf32>
    %cst_16 = arith.constant dense<0.000000e+00> : vector<64xf32>
    %35 = vector.multi_reduction <add>, %34, %cst_16 [1] : vector<64x16xf32> to vector<64xf32>
    %36 = vector.shape_cast %35 : vector<64xf32> to vector<64x1xf32>
    %37 = vector.broadcast %36 : vector<64x1xf32> to vector<64x16xf32>
    %38 = arith.divf %34, %37 : vector<64x16xf32>
    %c0_17 = arith.constant 0 : index
    %c0_18 = arith.constant 0 : index
    %39 = vector.load %arg5[%c0_17, %c0_18] : memref<64x16xf32, #tpu.memory_space<vmem>>, vector<64x16xf32>
    tpu.vector_store %arg5[%c0_17, %c0_18], %38 {strides = array<i32>} : memref<64x16xf32, #tpu.memory_space<vmem>>, vector<64x16xf32>,
    return
  }
}

</mosaic_0001>

<bundles_post_ra>
// kernel: forward.1
= control target key start
LH: loop header
LB: loop body
LE: loop exit
PB: predicated region body
PF: predicated region fallthrough
CT: control target
= control target key end

     0   :  { %vm22_vm0 = vcmask 261120   ;;  %s520_s20 = smov 96   ;;  %vm305_vm2 = vcmask 130048   ;;  %s684_s0 = inlined_call_operand.vmem [shape: f32[16,32], index: 0, kind: input, shape index: {}]   ;;  %s685_s3 = inlined_call_operand.vmem [shape: f32[32,64], index: 3, kind: input, shape index: {}]   ;;  %s686_s4 = inlined_call_operand.vmem [shape: f32[1,64], index: 4, kind: input, shape index: {}]   ;;  %s687_s2 = inlined_call_operand.vmem [shape: f32[64,32], index: 2, kind: input, shape index: {}]   ;;  %s688_s1 = inlined_call_operand.vmem [shape: f32[64,16], index: 1, kind: input, shape index: {}]   ;;  %s689_s5 = inlined_call_operand.vmem [shape: f32[64,16], index: 5, kind: output, shape index: {}]  }
   0x1   :  { %v20_v0 = vld [vmem:[%s684_s0] sm:$0xff]  ;;  %v21_v1 = vld [vmem:[%s684_s0 + $0x8] sm:$0xff]  ;;  %v52_v16 = vld [vmem:[%s685_s3 + $0x10] sm:$0xff] }
   0x2   :  { %v23_v2 = vsel %vm22_vm0, %v20_v0, 0.0  ;;  %v26_v3 = vsel %vm22_vm0, %v21_v1, 0.0  ;;  %v50_v14 = vld [vmem:[%s685_s3] sm:$0xff]  ;;  %v51_v15 = vld [vmem:[%s685_s3 + $0x8] sm:$0xff]  ;;  %v53_v18 = vld [vmem:[%s685_s3 + $0x18] sm:$0xff] }
   0x3   :  { %24 = vadd.xlane.f32.xlu0 %v23_v2  ;;  %v462_v17 = vpack.c.bf16 %v51_v15, %v50_v14  ;;  %v466_v19 = vpack.c.bf16 %v53_v18, %v52_v16  ;;  %v406_v30 = vld [vmem:[%s686_s4] ss:$0 sm:$0xff]  ;;  %v143_v31 = vld [vmem:[%s687_s2 + $0x8] sm:$0xff]  ;;  %v145_v33 = vld [vmem:[%s687_s2 + $0x18] sm:$0xff] }
   0x4   :  { %v147_v34 = vld [vmem:[%s687_s2 + $0x28] sm:$0xff]  ;;  %v149_v35 = vld [vmem:[%s687_s2 + $0x38] sm:$0xff]  ;;  %v142_v38 = vld [vmem:[%s687_s2] sm:$0xff] }
   0x5   :  { %463 = vmatprep.subr.bf16.mxu0 %v462_v17  ;;  %v144_v39 = vld [vmem:[%s687_s2 + $0x10] sm:$0xff]  ;;  %v146_v40 = vld [vmem:[%s687_s2 + $0x20] sm:$0xff]  ;;  %vm471_vm1 = vmpackc.low %vm22_vm0, %vm22_vm0 }
   0x6   :  { %465 = vmatpush3.bf16.msra.mxu0 %v462_v17  ;;  %v148_v42 = vld [vmem:[%s687_s2 + $0x30] sm:$0xff]  ;;  %v159_v56 = vld [vmem:[%s688_s1 + $0x8] sm:$0xff]  ;;  %v161_v58 = vld [vmem:[%s688_s1 + $0x18] sm:$0xff] }
   0x7   :  { %27 = vadd.xlane.f32.xlu0 %v26_v3  ;;  %467 = vmatprep.subr.bf16.mxu0 %v466_v19  ;;  %v162_v17 = vld [vmem:[%s688_s1 + $0x20] sm:$0xff] }
   0xa   :  { %469 = vmatpush3.bf16.msra.mxu0 %v466_v19 }
  0x90   :  { %v25_v4 = vpop.xlane.xlu0 %24 }
  0x91   :  { %v30_v5 = vmul.f32 0.03125, %v25_v4 }
  0x93   :  { %v32_v6 = vsub.f32 %v20_v0, %v30_v5 }
  0x94   :  { %v28_v7 = vpop.xlane.xlu0 %27 }
  0x95   :  { %v31_v8 = vmul.f32 0.03125, %v28_v7  ;;  %v34_v9 = vmul.f32 %v32_v6, %v32_v6  ;;  %v160_v7 = vld [vmem:[%s688_s1 + $0x10] sm:$0xff] }
  0x97   :  { %v33_v10 = vsub.f32 %v21_v1, %v31_v8  ;;  %v36_v11 = vsel %vm22_vm0, %v34_v9, 0.0  ;;  %v158_v1 = vld [vmem:[%s688_s1] sm:$0xff] }
  0x98   :  { %37 = vadd.xlane.f32.xlu1 %v36_v11 }
  0x99   :  { %v35_v12 = vmul.f32 %v33_v10, %v33_v10 }
  0x9b   :  { %v39_v13 = vsel %vm22_vm0, %v35_v12, 0.0 }
  0x9c   :  { %40 = vadd.xlane.f32.xlu1 %v39_v13  ;;  %v163_v13 = vld [vmem:[%s688_s1 + $0x28] sm:$0xff] }
 0x125   :  { %v38_v20 = vpop.xlane.xlu1 %37 }
 0x126   :  { %v42_v21 = vmul.f32 0.03125, %v38_v20  ;;  %v165_v20 = vld [vmem:[%s688_s1 + $0x38] sm:$0xff] }
 0x128   :  { %v44_v22 = vadd.f32 1e-05, %v42_v21 }
 0x129   :  { %v41_v23 = vpop.xlane.xlu1 %40 }
 0x12a   :  { %484 = vrsqrt.f32 %v44_v22  ;;  %v43_v24 = vmul.f32 0.03125, %v41_v23 }
 0x12c   :  { %v45_v25 = vadd.f32 1e-05, %v43_v24 }
 0x12e   :  { %486 = vrsqrt.f32 %v45_v25 }
 0x134   :  { %v485_v26 = vpop.eup %484 }
 0x135   :  { %v48_v27 = vmul.f32 %v485_v26, %v32_v6  ;;  %v164_v6 = vld [vmem:[%s688_s1 + $0x30] sm:$0xff] }
 0x137   :  { %443 = vmatprep.mubr.msk.f32.mxu0 %vm22_vm0, %v48_v27 }
 0x138   :  { %v487_v28 = vpop.eup %486 }
 0x139   :  { %v49_v29 = vmul.f32 %v487_v28, %v33_v10 }
 0x13b   :  { %444 = vmatmul.mubr.msk.f32.vlgmr.msra.gmra.mrb[0].mxu0 %vm22_vm0, %v49_v29 }
 0x20e   :  { %v445_v32 = vpop.f32.mrb[0].mxu0 }
 0x20f   :  { %v139_v36 = vadd.f32 %v445_v32, %v406_v30  ;;  %v133_v37 = vpop.f32.mrb[1].mxu0 }
 0x210   :  { %v134_v41 = vadd.f32 %v406_v30, %v133_v37 }
 0x211   :  { %v151_v43 = vmul.f32 %v143_v31, %v139_v36  ;;  %v153_v44 = vmul.f32 %v145_v33, %v139_v36  ;;  %v155_v45 = vmul.f32 %v147_v34, %v139_v36  ;;  %v157_v46 = vmul.f32 %v149_v35, %v139_v36 }
 0x212   :  { %v479_v47 = vpack.i.bf16 %v139_v36, %v134_v41  ;;  %v150_v48 = vmul.f32 %v142_v38, %v134_v41  ;;  %v152_v49 = vmul.f32 %v144_v39, %v134_v41  ;;  %v154_v50 = vmul.f32 %v146_v40, %v134_v41 }
 0x213   :  { %v156_v51 = vmul.f32 %v148_v42, %v134_v41 }
 0x214   :  { %480 = vrot.lane.b32.xlu0 %v479_v47, %s520_s20  ;;  %450 = vmatprep.mubr.msk.f32.mxu0 %vm22_vm0, %v150_v48 }
 0x215   :  { %453 = vmatprep.mubr.msk.f32.mxu1 %vm22_vm0, %v152_v49 }
 0x286   :  { %v481_v52 = vpop.permute.xlu0 %480 }
 0x287   :  { %v483_v53 = vunpack.i.h.bf16 %v481_v52  ;;  %v482_v54 = vunpack.i.l.bf16 %v481_v52 }
 0x289   :  { %v470_v55 = vpack.c.bf16 %v483_v53, %v482_v54 }
 0x28b   :  { %472 = vmatprep.subr.msk.bf16.mxu0 %vm471_vm1, %v470_v55  ;;  %476 = vmatprep.subr.msk.bf16.mxu1 %vm471_vm1, %v470_v55 }
 0x28c   :  { %475 = vmatpush3.bf16.xpose.msk.msra.mxu0 %vm471_vm1, %v470_v55  ;;  %477 = vmatpush3.bf16.xpose.msk.msra.mxu1 %vm471_vm1, %v470_v55 }
 0x293   :  { %451 = vmatmul.mubr.msk.f32.vlgmr.msra.gmra.mrb[2].mxu0 %vm22_vm0, %v151_v43  ;;  %454 = vmatmul.mubr.msk.f32.vlgmr.msra.gmra.mrb[0].mxu1 %vm22_vm0, %v153_v44 }
 0x294   :  { %456 = vmatprep.mubr.msk.f32.mxu1 %vm22_vm0, %v154_v50 }
 0x297   :  { %457 = vmatmul.mubr.msk.f32.gmra.mrb[2].mxu1 %vm22_vm0, %v155_v45 }
 0x298   :  { %459 = vmatprep.mubr.msk.f32.mxu1 %vm22_vm0, %v156_v51 }
 0x29b   :  { %460 = vmatmul.mubr.msk.f32.gmra.mrb[4].mxu1 %vm22_vm0, %v157_v46 }
 0x366   :  { %v452_v57 = vpop.f32.mrb[2].mxu0  ;;  %v455_v59 = vpop.f32.mrb[0].mxu1 }
 0x367   :  { %v272_v60 = vadd.f32 %v452_v57, %v159_v56  ;;  %v266_v61 = vpop.f32.mrb[3].mxu0  ;;  %v276_v62 = vpop.f32.mrb[1].mxu1  ;;  %v282_v63 = vadd.f32 %v455_v59, %v161_v58 }
 0x368   :  { %v267_v4 = vadd.f32 %v266_v61, %v158_v1  ;;  %v277_v11 = vadd.f32 %v276_v62, %v160_v7 }
 0x369   :  { %v309_v0 = vsel %vm305_vm2, %v272_v60, -inf  ;;  %v315_v5 = vsel %vm305_vm2, %v282_v63, -inf }
 0x36a   :  { %v458_v2 = vpop.f32.mrb[2].mxu1  ;;  %310 = vmax.xlane.f32.xlu1 %v309_v0  ;;  %v306_v12 = vsel %vm305_vm2, %v267_v4, -inf  ;;  %v312_v16 = vsel %vm305_vm2, %v277_v11, -inf }
 0x36b   :  { %v286_v3 = vpop.f32.mrb[3].mxu1  ;;  %v292_v15 = vadd.f32 %v458_v2, %v163_v13 }
 0x36c   :  { %v287_v18 = vadd.f32 %v286_v3, %v162_v17 }
 0x36d   :  { %v321_v19 = vsel %vm305_vm2, %v292_v15, -inf }
 0x36e   :  { %v461_v8 = vpop.f32.mrb[4].mxu1  ;;  %316 = vmax.xlane.f32.xlu1 %v315_v5  ;;  %v318_v22 = vsel %vm305_vm2, %v287_v18, -inf }
 0x36f   :  { %v296_v9 = vpop.f32.mrb[5].mxu1  ;;  %v302_v21 = vadd.f32 %v461_v8, %v165_v20 }
 0x370   :  { %v297_v10 = vadd.f32 %v296_v9, %v164_v6 }
 0x371   :  { %v327_v23 = vsel %vm305_vm2, %v302_v21, -inf }
 0x372   :  { %307 = vmax.xlane.f32.xlu1 %v306_v12  ;;  %v324_v14 = vsel %vm305_vm2, %v297_v10, -inf }
 0x373   :  { %325 = vmax.xlane.f32.xlu0 %v324_v14 }
 0x376   :  { %313 = vmax.xlane.f32.xlu1 %v312_v16 }
 0x37a   :  { %322 = vmax.xlane.f32.xlu1 %v321_v19 }
 0x37e   :  { %319 = vmax.xlane.f32.xlu1 %v318_v22 }
 0x382   :  { %328 = vmax.xlane.f32.xlu1 %v327_v23 }
 0x3f7   :  { %v311_v24 = vpop.xlane.xlu1 %310 }
 0x3f8   :  { %v331_v25 = vsub.f32 %v272_v60, %v311_v24 }
 0x3fa   :  { %v340_v26 = vmul.f32 1.442695, %v331_v25 }
 0x3fb   :  { %v317_v27 = vpop.xlane.xlu1 %316 }
 0x3fc   :  { %488 = vpow2.f32 %v340_v26  ;;  %v333_v28 = vsub.f32 %v282_v63, %v317_v27 }
 0x3fe   :  { %v344_v29 = vmul.f32 1.442695, %v333_v28 }
 0x3ff   :  { %v308_v30 = vpop.xlane.xlu1 %307 }
 0x400   :  { %490 = vpow2.f32 %v344_v29  ;;  %v330_v31 = vsub.f32 %v267_v4, %v308_v30  ;;  %v326_v37 = vpop.xlane.xlu0 %325 }
 0x401   :  { %v336_v42 = vsub.f32 %v297_v10, %v326_v37 }
 0x402   :  { %v338_v32 = vmul.f32 1.442695, %v330_v31 }
 0x403   :  { %v314_v33 = vpop.xlane.xlu1 %313  ;;  %v350_v48 = vmul.f32 1.442695, %v336_v42 }
 0x404   :  { %492 = vpow2.f32 %v338_v32  ;;  %v332_v34 = vsub.f32 %v277_v11, %v314_v33 }
 0x406   :  { %v489_v35 = vpop.eup %488  ;;  %v342_v36 = vmul.f32 1.442695, %v332_v34 }
 0x407   :  { %v323_v38 = vpop.xlane.xlu1 %322  ;;  %v357_v39 = vsel %vm305_vm2, %v489_v35, 0.0 }
 0x408   :  { %494 = vpow2.f32 %v342_v36  ;;  %v335_v40 = vsub.f32 %v292_v15, %v323_v38  ;;  %358 = vadd.xlane.f32.xlu1 %v357_v39 }
 0x40a   :  { %v491_v41 = vpop.eup %490  ;;  %v348_v43 = vmul.f32 1.442695, %v335_v40 }
 0x40b   :  { %v320_v44 = vpop.xlane.xlu1 %319  ;;  %v363_v45 = vsel %vm305_vm2, %v491_v41, 0.0 }
 0x40c   :  { %496 = vpow2.f32 %v348_v43  ;;  %v334_v46 = vsub.f32 %v287_v18, %v320_v44  ;;  %364 = vadd.xlane.f32.xlu1 %v363_v45 }
 0x40e   :  { %v493_v47 = vpop.eup %492  ;;  %v346_v49 = vmul.f32 1.442695, %v334_v46 }
 0x40f   :  { %v329_v50 = vpop.xlane.xlu1 %328  ;;  %v354_v51 = vsel %vm305_vm2, %v493_v47, 0.0 }
 0x410   :  { %498 = vpow2.f32 %v346_v49  ;;  %v337_v52 = vsub.f32 %v302_v21, %v329_v50  ;;  %355 = vadd.xlane.f32.xlu1 %v354_v51 }
 0x411   :  { %500 = vpow2.f32 %v350_v48 }
 0x412   :  { %v495_v53 = vpop.eup %494  ;;  %v352_v54 = vmul.f32 1.442695, %v337_v52 }
 0x413   :  { %v360_v55 = vsel %vm305_vm2, %v495_v53, 0.0 }
 0x414   :  { %502 = vpow2.f32 %v352_v54  ;;  %361 = vadd.xlane.f32.xlu1 %v360_v55 }
 0x416   :  { %v497_v56 = vpop.eup %496 }
 0x417   :  { %v369_v57 = vsel %vm305_vm2, %v497_v56, 0.0 }
 0x418   :  { %370 = vadd.xlane.f32.xlu1 %v369_v57 }
 0x41a   :  { %v499_v58 = vpop.eup %498 }
 0x41b   :  { %v366_v59 = vsel %vm305_vm2, %v499_v58, 0.0  ;;  %v501_v60 = vpop.eup %500 }
 0x41c   :  { %367 = vadd.xlane.f32.xlu1 %v366_v59  ;;  %v372_v62 = vsel %vm305_vm2, %v501_v60, 0.0 }
 0x41e   :  { %v503_v61 = vpop.eup %502 }
 0x41f   :  { %v375_v63 = vsel %vm305_vm2, %v503_v61, 0.0 }
 0x420   :  { %373 = vadd.xlane.f32.xlu1 %v372_v62  ;;  %376 = vadd.xlane.f32.xlu0 %v375_v63 }
 0x495   :  { %v359_v0 = vpop.xlane.xlu1 %358 }
 0x496   :  { %504 = vrcp.f32 %v359_v0 }
 0x499   :  { %v365_v1 = vpop.xlane.xlu1 %364 }
 0x49a   :  { %506 = vrcp.f32 %v365_v1 }
 0x49d   :  { %v356_v2 = vpop.xlane.xlu1 %355 }
 0x49e   :  { %508 = vrcp.f32 %v356_v2 }
 0x4a0   :  { %v505_v3 = vpop.eup %504 }
 0x4a1   :  { %v381_v4 = vmul.f32 %v505_v3, %v489_v35  ;;  %v362_v5 = vpop.xlane.xlu1 %361 }
 0x4a2   :  { %510 = vrcp.f32 %v362_v5 }
 0x4a3   :  { %395 = vst.msk [vmem:[%s689_s5 + $0x8] sm:$0xff] %vm305_vm2, %v381_v4 }
 0x4a4   :  { %v507_v6 = vpop.eup %506 }
 0x4a5   :  { %v385_v7 = vmul.f32 %v507_v6, %v491_v41  ;;  %v371_v8 = vpop.xlane.xlu1 %370 }
 0x4a6   :  { %512 = vrcp.f32 %v371_v8 }
 0x4a7   :  { %397 = vst.msk [vmem:[%s689_s5 + $0x18] sm:$0xff] %vm305_vm2, %v385_v7 }
 0x4a8   :  { %v509_v9 = vpop.eup %508 }
 0x4a9   :  { %v379_v10 = vmul.f32 %v509_v9, %v493_v47  ;;  %v368_v11 = vpop.xlane.xlu1 %367 }
 0x4aa   :  { %514 = vrcp.f32 %v368_v11 }
 0x4ab   :  { %394 = vst.msk [vmem:[%s689_s5] sm:$0xff] %vm305_vm2, %v379_v10 }
 0x4ac   :  { %v511_v12 = vpop.eup %510 }
 0x4ad   :  { %v383_v13 = vmul.f32 %v511_v12, %v495_v53  ;;  %v377_v14 = vpop.xlane.xlu0 %376  ;;  %v374_v15 = vpop.xlane.xlu1 %373 }
 0x4ae   :  { %516 = vrcp.f32 %v377_v14 }
 0x4af   :  { %396 = vst.msk [vmem:[%s689_s5 + $0x10] sm:$0xff] %vm305_vm2, %v383_v13  ;;  %518 = vrcp.f32 %v374_v15 }
 0x4b0   :  { %v513_v16 = vpop.eup %512 }
 0x4b1   :  { %v389_v17 = vmul.f32 %v513_v16, %v497_v56 }
 0x4b3   :  { %399 = vst.msk [vmem:[%s689_s5 + $0x28] sm:$0xff] %vm305_vm2, %v389_v17 }
 0x4b4   :  { %v515_v18 = vpop.eup %514 }
 0x4b5   :  { %v387_v19 = vmul.f32 %v515_v18, %v499_v58 }
 0x4b7   :  { %398 = vst.msk [vmem:[%s689_s5 + $0x20] sm:$0xff] %vm305_vm2, %v387_v19 }
 0x4b8   :  { %v517_v20 = vpop.eup %516 }
 0x4b9   :  { %v519_v21 = vpop.eup %518  ;;  %v393_v22 = vmul.f32 %v517_v20, %v503_v61 }
 0x4ba   :  { %v391_v23 = vmul.f32 %v519_v21, %v501_v60 }
 0x4bb   :  { %401 = vst.msk [vmem:[%s689_s5 + $0x38] sm:$0xff] %vm305_vm2, %v393_v22 }
 0x4bc   :  { %400 = vst.msk [vmem:[%s689_s5 + $0x30] sm:$0xff] %vm305_vm2, %v391_v23 }

</bundles_post_ra>
